<compile_context>
chip_gen: v7x
topology: tpu7x:2x2x1
jax: 0.10.0
libtpu: 0.0.40
codegen_flags: <defaults>
</compile_context>

<pallas_src>
import functools

import jax
import jax.numpy as jnp
from jax import lax
from jax.experimental import pallas as pl
from jax.experimental.pallas import tpu as pltpu

_BIG = 1e9   # pre-mask sentinel: relu(margin +/- BIG ...) == 0 and exp(-BIG) == 0 exactly


def _part_triplet_kernel(hp_ref, feat_ref, out_ref, *, margin, dist_type):
    """One grid step handles P parts.

    hp_ref:   (1, m, P*m) f32 in {0,1}; hp[0, b, q*m+i] = 1 iff label[q, b] == label[q, i].
    feat_ref: (P, m, d) features of this step's parts.
    out_ref:  (1, 2, P*m) f32; row 0 = per-anchor triplet-loss sums, row 1 = per-anchor
              nonzero-triplet counts (per-part reduction is finished in the wrapper).
    """
    P, m, d = feat_ref.shape
    Pm = P * m

    x = feat_ref[...]
    xf = x.astype(jnp.float32)

    # Block-diagonal (per-part) distances only -- cross-part pairs are never consumed.
    if dist_type == 'euc':
        g = jnp.einsum('pid,pjd->pij', x, x,
                       preferred_element_type=jnp.float32)            # (P, m, m) MXU
        sq = jnp.sum(xf * xf, axis=2)                                  # (P, m)
        d2 = sq[:, :, None] + sq[:, None, :] - 2.0 * g
        dist = jnp.sqrt(jnp.maximum(d2, 0.0))                          # (P, m, m)
        # TODO(synk): if a backward pass is ever needed, clamp d2 at ~1e-12 before the
        # sqrt (gradient at exact zeros is inf); forward matches torch.sqrt(relu(.)).
    else:  # 'cos'
        inv_n = lax.rsqrt(jnp.maximum(jnp.sum(xf * xf, axis=2, keepdims=True), 1e-24))
        xn = xf * inv_n
        g = jnp.einsum('pid,pjd->pij', xn, xn,
                       preferred_element_type=jnp.float32)
        dist = (1.0 - g) * 8.0

    # Lane-dense layout: anchor index a = q*m + i on the (>=128) lane axis, the
    # part-local partner index on sublanes.  One small 2-D transpose.
    distT = dist.reshape(Pm, m).T                                      # (m, Pm)

    hpT = hp_ref[0] > 0.5                                              # (m, Pm) bool
    # Pre-masked distances: invalid positive / negative pairs go to -/+BIG so the
    # relu / softplus is exactly 0 there -- no hp x hn mask outer product needed.
    dposT = jnp.where(hpT, distT, jnp.float32(-_BIG))                  # (m, Pm)
    dnegT = jnp.where(hpT, jnp.float32(_BIG), distT)                   # (m, Pm)

    # Triplet slab (pos b, neg c, anchor a): fully dense (m, m, Pm).
    diff = dposT[:, None, :] - dnegT[None, :, :]                       # (m, m, Pm)
    if margin > 0:
        tri = jnp.maximum(margin + diff, 0.0)
    else:
        tri = jax.nn.softplus(diff)

    tri2 = tri.reshape(m * m, Pm)
    loss_a = jnp.sum(tri2, axis=0, keepdims=True)                      # (1, Pm)
    nz_a = jnp.sum((tri2 > 0.0).astype(jnp.float32), axis=0, keepdims=True)

    out_ref[0] = jnp.concatenate([loss_a, nz_a], axis=0)               # (2, Pm), one store


def _num_tensorcores_per_device():
    """Pallas grids are sharded across TensorCores only on 'megacore' devices."""
    try:
        kind = (jax.devices()[0].device_kind or '').lower()
    except Exception:
        return 1
    return 2 if any(t in kind for t in ('v4', 'v5p', 'v7')) else 1


def _choose_parts_per_step(n, m, d, num_tc):
    """Parts stacked per grid step.

    Per-step working set: feature block (P, m, d), (P, m, m) distances/masks and the
    (m, m, P*m) f32 triplet slab.  Keep it well inside VMEM; keep the anchor lane axis
    (P*m) >= 128 when the problem size allows; only split into 2 steps on dual-TC chips.
    """
    slab_budget = 4 << 20            # bytes for the (m, m, P*m) f32 triplet slab
    feat_budget = 8 << 20            # bytes for the (P, m, d) feature block
    lane_cap = 2048                  # cap on the P*m lane axis
    p = max(1, min(n,
                   lane_cap // max(m, 1),
                   slab_budget // max(4 * m * m * m, 1),
                   feat_budget // max(4 * m * d, 1)))
    if num_tc >= 2 and n >= 2 and n * m >= 256:
        # Dual-TensorCore chips: keep >= 2 grid steps so both cores get work, but only
        # when each step still has >= 128 anchor lanes.
        p = min(p, (n + 1) // 2)
    return max(p, 1)


def part_triplet_loss(feature, label, *, margin=0.2, nonzero=True, dist_type='euc'):
    # TODO(synk): heter_mining / hard_mining / part_mining (torch.topk) branches are not
    # implemented (module defaults are False); only the default forward path is kernelized.
    assert dist_type in ('euc', 'cos')
    n, m, d = feature.shape
    if not jnp.issubdtype(feature.dtype, jnp.floating):
        feature = feature.astype(jnp.float32)
    label = label.astype(jnp.int32)

    P = _choose_parts_per_step(n, m, d, _num_tensorcores_per_device())
    num_chunks = -(-n // P)
    n_pad = num_chunks * P
    if n_pad != n:
        feature_p = jnp.concatenate(
            [feature, jnp.zeros((n_pad - n, m, d), feature.dtype)], axis=0)
        label_p = jnp.concatenate(
            [label, jnp.zeros((n_pad - n, m), jnp.int32)], axis=0)
    else:
        feature_p, label_p = feature, label
    Pm = P * m

    # Same-label mask directly in the kernel's transposed, lane-dense (m, P*m) layout:
    # hpT[c, b, q*m + i] = 1 iff label[c*P + q, b] == label[c*P + q, i].  This is the
    # only label-derived input (a few KiB per step); the same-part constraint is
    # implicit in the per-part block-diagonal formulation.
    lab_c = label_p.reshape(num_chunks, P, m)
    same = lab_c[:, :, :, None] == lab_c[:, :, None, :]                # (C, P, b, i)
    hpT = jnp.transpose(same, (0, 2, 1, 3)).reshape(
        num_chunks, m, Pm).astype(jnp.float32)

    kernel = functools.partial(_part_triplet_kernel,
                               margin=float(margin), dist_type=dist_type)
    out = pl.pallas_call(
        kernel,
        out_shape=jax.ShapeDtypeStruct((num_chunks, 2, Pm), jnp.float32),
        grid=(num_chunks,),
        in_specs=[pl.BlockSpec((1, m, Pm), lambda c: (c, 0, 0)),
                  pl.BlockSpec((P, m, d), lambda c: (c, 0, 0))],
        out_specs=pl.BlockSpec((1, 2, Pm), lambda c: (c, 0, 0)),
        compiler_params=pltpu.CompilerParams(dimension_semantics=("parallel",)),
    )(hpT, feature_p)

    # Tiny JAX epilogue: per-anchor sums -> per-part sums / counts.
    loss_sum = jnp.sum(out[:, 0, :].reshape(n_pad, m)[:n], axis=1)     # (n,)
    nz = jnp.sum(out[:, 1, :].reshape(n_pad, m)[:n], axis=1)           # (n,)

    if nonzero:
        mean_per_part = jnp.where(nz == 0, 0.0, loss_sum / jnp.maximum(nz, 1.0))
    else:
        same_full = label[:, :, None] == label[:, None, :]
        pos = jnp.sum(same_full, axis=-1)
        denom = jnp.sum(pos * (m - pos), axis=-1).astype(jnp.float32)
        mean_per_part = loss_sum / denom

    return jnp.mean(mean_per_part), jnp.mean(nz)


def _reference(feature, label, margin=0.2):
    """Pure-JAX mirror of the PyTorch forward (euc, nonzero=True, no mining)."""
    n, m, d = feature.shape
    f32 = feature.astype(jnp.float32)
    x2 = jnp.sum(f32 ** 2, axis=2)
    g = jnp.einsum('nid,njd->nij', f32, f32)
    dist = jnp.sqrt(jnp.maximum(x2[:, :, None] + x2[:, None, :] - 2.0 * g, 0.0))
    hp = label[:, :, None] == label[:, None, :]
    tri = jnp.maximum(margin + dist[:, :, :, None] - dist[:, :, None, :], 0.0)
    mask = hp[:, :, :, None] & (~hp)[:, :, None, :]
    masked = jnp.where(mask, tri, 0.0).reshape(n, -1)
    loss_sum = masked.sum(1)
    nz = (masked > 0).sum(1).astype(jnp.float32)
    mean = jnp.where(nz == 0, 0.0, loss_sum / jnp.maximum(nz, 1.0))
    return mean.mean(), nz.mean()


if __name__ == "__main__":
    key = jax.random.PRNGKey(0)
    n_parts, m, d = 16, 8, 32                     # parts, batch (4 ids x 2 samples), feat dim
    feature = jax.random.normal(key, (n_parts, m, d), dtype=jnp.float32)
    base_label = jnp.array([0, 0, 1, 1, 2, 2, 3, 3], dtype=jnp.int32)
    label = jnp.broadcast_to(base_label, (n_parts, m))

    loss, nz_mean = part_triplet_loss(feature, label, margin=0.2)
    loss = jax.block_until_ready(loss)
    nz_mean = jax.block_until_ready(nz_mean)

    ref_loss, ref_nz = _reference(feature, label, margin=0.2)
    assert jnp.allclose(loss, ref_loss, atol=1e-4, rtol=1e-4), (loss, ref_loss)
    assert jnp.allclose(nz_mean, ref_nz, atol=1e-4, rtol=1e-4), (nz_mean, ref_nz)

    print("KERNEL_OK")
</pallas_src>

<mosaic_0001>
module attributes {stable_mosaic.version = 11 : i64} {
  func.func @_part_triplet_kernel(%arg0: i32, %arg1: memref<1x8x128xf32, #tpu.memory_space<vmem>>, %arg2: memref<16x8x32xf32, #tpu.memory_space<vmem>>, %arg3: memref<1x2x128xf32, #tpu.memory_space<vmem>>) attributes {dimension_semantics = [#tpu.dimension_semantics<parallel>], iteration_bounds = array<i64: 1>, scalar_prefetch = 0 : i64, scratch_operands = 0 : i64, tpu.core_type = #tpu.core_type<tc>, window_params = [{transform_indices = @transform_0, window_bounds = array<i64: 1, 8, 128>}, {transform_indices = @transform_1, window_bounds = array<i64: 16, 8, 32>}, {transform_indices = @transform_2, window_bounds = array<i64: 1, 2, 128>}]} {
    %c0 = arith.constant 0 : index
    %c0_0 = arith.constant 0 : index
    %c0_1 = arith.constant 0 : index
    %0 = vector.load %arg2[%c0, %c0_0, %c0_1] : memref<16x8x32xf32, #tpu.memory_space<vmem>>, vector<16x8x32xf32>
    "tpu.trace_start"() <{level = 10 : i32, message = "pid,pjd->pij"}> : () -> ()
    %cst = arith.constant dense<0.000000e+00> : vector<16x8x8xf32>
    %1 = tpu.matmul %0, %0, %cst {dimension_numbers = #tpu.dot_dimension_numbers<[2], [2], [1], [1], [0, 0, 0, 1, 1, 1], [0], [0]>} : vector<16x8x32xf32>, vector<16x8x32xf32>, vector<16x8x8xf32> -> vector<16x8x8xf32>
    "tpu.trace_stop"() : () -> ()
    %2 = arith.mulf %0, %0 : vector<16x8x32xf32>
    %cst_2 = arith.constant dense<0.000000e+00> : vector<16x8xf32>
    %3 = vector.multi_reduction <add>, %2, %cst_2 [2] : vector<16x8x32xf32> to vector<16x8xf32>
    %4 = vector.shape_cast %3 : vector<16x8xf32> to vector<16x8x1xf32>
    %5 = vector.shape_cast %3 : vector<16x8xf32> to vector<16x1x8xf32>
    %6 = vector.broadcast %4 : vector<16x8x1xf32> to vector<16x8x8xf32>
    %7 = vector.broadcast %5 : vector<16x1x8xf32> to vector<16x8x8xf32>
    %8 = arith.addf %6, %7 : vector<16x8x8xf32>
    %cst_3 = arith.constant 2.000000e+00 : f32
    %9 = vector.broadcast %cst_3 : f32 to vector<16x8x8xf32>
    %10 = arith.mulf %9, %1 : vector<16x8x8xf32>
    %11 = arith.subf %8, %10 : vector<16x8x8xf32>
    %cst_4 = arith.constant 0.000000e+00 : f32
    %12 = vector.broadcast %cst_4 : f32 to vector<16x8x8xf32>
    %13 = arith.maximumf %11, %12 : vector<16x8x8xf32>
    %14 = math.sqrt %13 : vector<16x8x8xf32>
    %15 = vector.shape_cast %14 : vector<16x8x8xf32> to vector<128x8xf32>
    %16 = tpu.transpose %15, [1, 0] : vector<128x8xf32> -> vector<8x128xf32>
    %c0_5 = arith.constant 0 : index
    %c0_6 = arith.constant 0 : index
    %c0_7 = arith.constant 0 : index
    %17 = vector.load %arg1[%c0_5, %c0_6, %c0_7] : memref<1x8x128xf32, #tpu.memory_space<vmem>>, vector<1x8x128xf32>
    %18 = vector.shape_cast %17 : vector<1x8x128xf32> to vector<8x128xf32>
    %cst_8 = arith.constant 5.000000e-01 : f32
    %19 = vector.broadcast %cst_8 : f32 to vector<8x128xf32>
    %20 = arith.cmpf ogt, %18, %19 : vector<8x128xf32>
    %cst_9 = arith.constant -1.000000e+09 : f32
    %21 = vector.broadcast %cst_9 : f32 to vector<8x128xf32>
    %22 = arith.select %20, %16, %21 : vector<8x128xi1>, vector<8x128xf32>
    %cst_10 = arith.constant 1.000000e+09 : f32
    %23 = vector.broadcast %cst_10 : f32 to vector<8x128xf32>
    %24 = arith.select %20, %23, %16 : vector<8x128xi1>, vector<8x128xf32>
    %25 = vector.shape_cast %22 : vector<8x128xf32> to vector<8x1x128xf32>
    %26 = vector.shape_cast %24 : vector<8x128xf32> to vector<1x8x128xf32>
    %27 = vector.broadcast %25 : vector<8x1x128xf32> to vector<8x8x128xf32>
    %28 = vector.broadcast %26 : vector<1x8x128xf32> to vector<8x8x128xf32>
    %29 = arith.subf %27, %28 : vector<8x8x128xf32>
    %cst_11 = arith.constant 2.000000e-01 : f32
    %30 = vector.broadcast %cst_11 : f32 to vector<8x8x128xf32>
    %31 = arith.addf %30, %29 : vector<8x8x128xf32>
    %cst_12 = arith.constant 0.000000e+00 : f32
    %32 = vector.broadcast %cst_12 : f32 to vector<8x8x128xf32>
    %33 = arith.maximumf %31, %32 : vector<8x8x128xf32>
    %34 = vector.shape_cast %33 : vector<8x8x128xf32> to vector<64x128xf32>
    %cst_13 = arith.constant dense<0.000000e+00> : vector<128xf32>
    %35 = vector.multi_reduction <add>, %34, %cst_13 [0] : vector<64x128xf32> to vector<128xf32>
    %36 = vector.shape_cast %35 : vector<128xf32> to vector<1x128xf32>
    %cst_14 = arith.constant 0.000000e+00 : f32
    %37 = vector.broadcast %cst_14 : f32 to vector<64x128xf32>
    %38 = arith.cmpf ogt, %34, %37 : vector<64x128xf32>
    %39 = arith.extui %38 : vector<64x128xi1> to vector<64x128xi32>
    %40 = arith.sitofp %39 : vector<64x128xi32> to vector<64x128xf32>
    %cst_15 = arith.constant dense<0.000000e+00> : vector<128xf32>
    %41 = vector.multi_reduction <add>, %40, %cst_15 [0] : vector<64x128xf32> to vector<128xf32>
    %42 = vector.shape_cast %41 : vector<128xf32> to vector<1x128xf32>
    %43 = tpu.concatenate %36, %42 in 0 : vector<1x128xf32>, vector<1x128xf32> -> vector<2x128xf32>
    %c0_16 = arith.constant 0 : index
    %c0_17 = arith.constant 0 : index
    %c0_18 = arith.constant 0 : index
    %44 = vector.load %arg3[%c0_16, %c0_17, %c0_18] : memref<1x2x128xf32, #tpu.memory_space<vmem>>, vector<1x2x128xf32>
    %45 = vector.shape_cast %44 : vector<1x2x128xf32> to vector<2x128xf32>
    %46 = vector.shape_cast %43 : vector<2x128xf32> to vector<1x2x128xf32>
    tpu.vector_store %arg3[%c0_16, %c0_17, %c0_18], %46 {strides = array<i32>} : memref<1x2x128xf32, #tpu.memory_space<vmem>>, vector<1x2x128xf32>,
    return
  }
  func.func @transform_0(%arg0: i32) -> (i32, i32, i32) {
    %c0_i32 = arith.constant 0 : i32
    %c0_i32_0 = arith.constant 0 : i32
    %c0_i32_1 = arith.constant 0 : i32
    return %arg0, %c0_i32, %c0_i32_0 : i32, i32, i32
  }
  func.func @transform_1(%arg0: i32) -> (i32, i32, i32) {
    %c0_i32 = arith.constant 0 : i32
    %c0_i32_0 = arith.constant 0 : i32
    %c0_i32_1 = arith.constant 0 : i32
    return %arg0, %c0_i32, %c0_i32_0 : i32, i32, i32
  }
  func.func @transform_2(%arg0: i32) -> (i32, i32, i32) {
    %c0_i32 = arith.constant 0 : i32
    %c0_i32_0 = arith.constant 0 : i32
    %c0_i32_1 = arith.constant 0 : i32
    return %arg0, %c0_i32, %c0_i32_0 : i32, i32, i32
  }
}

</mosaic_0001>

<bundles_post_ra>
// kernel: tpu_custom_call.1
= control target key start
LH: loop header
LB: loop body
LE: loop exit
PB: predicated region body
PF: predicated region fallthrough
CT: control target
= control target key end

     0   :  { %7 = vsyncpa [#allocation3], 0  ;;  %s2485_s0 = inlined_call_operand.hbm [shape: f32[1,8,128], index: 0, kind: input, shape index: {}]   ;;  %s2486_s1 = inlined_call_operand.hbm [shape: f32[16,8,32], index: 1, kind: input, shape index: {}]   ;;  %s2487_s2 = inlined_call_operand.hbm [shape: f32[1,2,128], index: 2, kind: output, shape index: {}]  }
   0x1   :  { %8 = vsyncpa [#allocation6], 0 }
   0x2   :  { %9 = vsyncpa [#allocation4], 0  ;;  %s2146_s9 = smov [#allocation2]   ;;  %s2147_s11 = smov [#allocation5]  }
   0x3   :  { %s16_s10 = sshll.u32 %s2146_s9, 4  ;;  %s25_s12 = sshll.u32 %s2147_s11, 4  ;;  %s17_s10 = int_to_ptr.vmem [resolvable:$true] %s16_s10  ;;  %s2169_s12 = int_to_ptr.vmem [resolvable:$true] %s25_s12 }
   0x4   :  { %s2074_s15 = scalar_lea.hbm %s2485_s0, 128 }
   0x5   :  { %p2075_p0 = scmp.ne.s32.totalorder %s2485_s0, %s2074_s15  ;;  %p2078_p1 = scmp.lt.u32.totalorder %s2074_s15, %s2485_s0 }
   0x7   :  { %p2080_p2 = pnand %p2078_p1, %p2075_p0 }
   0x9   :  { %2083 = shalt.err (!%p2080_p2)
}
   0xa   :  { %s2084_s20 = scalar_lea.vmem %s17_s10, 128  ;;  %p2089_p4 = scmp.lt.s32.totalorder %s17_s10, %s17_s10 }
   0xb   :  { %p2085_p3 = scmp.ne.s32.totalorder %s17_s10, %s2084_s20  ;;  %p2090_p5 = scmp.lt.s32.totalorder %s2084_s20, %s2084_s20 }
   0xd   :  { %p2091_p6 = por %p2090_p5, %p2089_p4 }
   0xf   :  { %p2092_p7 = pnand %p2091_p6, %p2085_p3 }
  0x11   :  { %2095 = shalt.err (!%p2092_p7)
}
  0x12   :  { %19 = dma.hbm_to_vmem [thread:$0]  %s2485_s0, 128, %s17_s10, [#allocation3]  }
  0x13   :  { %s2096_s25 = scalar_lea.hbm %s2486_s1, 2048 }
  0x14   :  { %p2097_p8 = scmp.ne.s32.totalorder %s2486_s1, %s2096_s25  ;;  %p2100_p9 = scmp.lt.u32.totalorder %s2096_s25, %s2486_s1 }
  0x16   :  { %p2102_p10 = pnand %p2100_p9, %p2097_p8 }
  0x18   :  { %2105 = shalt.err (!%p2102_p10)
}
  0x19   :  { %s2106_s30 = scalar_lea.vmem %s2169_s12, 2048  ;;  %p2111_p12 = scmp.lt.s32.totalorder %s2169_s12, %s2169_s12 }
  0x1a   :  { %p2107_p11 = scmp.ne.s32.totalorder %s2169_s12, %s2106_s30  ;;  %p2112_p13 = scmp.lt.s32.totalorder %s2106_s30, %s2106_s30 }
  0x1c   :  { %p2113_p0 = por %p2112_p13, %p2111_p12 }
  0x1e   :  { %p2114_p1 = pnand %p2113_p0, %p2107_p11 }
  0x20   :  { %2117 = shalt.err (!%p2114_p1)
}
  0x21   :  { %s2148_s0 = smov 128   ;;  %s2149_s3 = smov 8  }
  0x22   :  { %31 = dma.hbm_to_vmem [thread:$0]  %s2486_s1, 2048, %s2169_s12, [#allocation6], %s2148_s0, %s2148_s0, %s2149_s3  }
  0x23   :  { %2140 = dma.done.wait [#allocation3], 128  }
  0x24   :  { %2141 = vsyncadd [#allocation3], 4294967168 }
  0x25   :  { %2142 = dma.done.wait [#allocation6], 2048  }
  0x26   :  { %2143 = vsyncadd [#allocation6], 4294965248  ;;  %v2150_v0 = vmov 0.0   ;;  %vm2151_vm0 = vmmov 0   ;;  %vm54_vm1 = vcmask 261120   ;;  %v38_v1 = vld [vmem:[#allocation5] sm:$0xff]  ;;  %v1303_v49 = vlaneseq }
  0x27   :  { %1954 = vmatprep.subr.mxu0 %v2150_v0  ;;  %1959 = vmatprep.subr.mxu1 %v2150_v0  ;;  %v2206_v2 = vld [vmem:[#allocation5 + $0x8] sm:$0xff]  ;;  %v40_v3 = vld [vmem:[#allocation5 + $0x10] sm:$0xff]  ;;  %v2213_v4 = vld [vmem:[#allocation5 + $0x18] sm:$0xff]  ;;  %v1223_v9 = vmul.f32 %v38_v1, %v38_v1  ;;  %s2153_s1 = smov [#allocation7]  }
  0x28   :  { %1956 = vmatprep.mubr.msk.f32.mxu0 %vm2151_vm0, %v2150_v0  ;;  %1961 = vmatprep.mubr.msk.f32.mxu1 %vm2151_vm0, %v2150_v0  ;;  %v2225_v5 = vld [vmem:[#allocation5 + $0x20] sm:$0xff]  ;;  %v2227_v6 = vld [vmem:[#allocation5 + $0x28] sm:$0xff]  ;;  %v2242_v7 = vld [vmem:[#allocation5 + $0x30] sm:$0xff]  ;;  %v1225_v17 = vmul.f32 %v40_v3, %v40_v3  ;;  %v1224_v18 = vmul.f32 %v2206_v2, %v2206_v2  ;;  %v1226_v22 = vmul.f32 %v2213_v4, %v2213_v4  ;;  %v1304_v52 = vand.u32 127, %v1303_v49  ;;  %s1872_s6 = sshll.u32 %s2153_s1, 4  ;;  %s1873_s6 = int_to_ptr.vmem [resolvable:$true] %s1872_s6 }
  0x29   :  { %1955 = vmatpush3.xpose.msk.msra.mxu0 %vm54_vm1, %v38_v1  ;;  %1960 = vmatpush3.xpose.msk.msra.mxu1 %vm54_vm1, %v2206_v2  ;;  %v2244_v8 = vld [vmem:[#allocation5 + $0x38] sm:$0xff]  ;;  %v46_v10 = vld [vmem:[#allocation5 + $0x40] sm:$0xff]  ;;  %v47_v11 = vld [vmem:[#allocation5 + $0x48] sm:$0xff]  ;;  %v1239_v12 = vsel %vm54_vm1, %v1223_v9, 0.0  ;;  %v1227_v24 = vmul.f32 %v2225_v5, %v2225_v5  ;;  %v1228_v26 = vmul.f32 %v2227_v6, %v2227_v6  ;;  %v1229_v28 = vmul.f32 %v2242_v7, %v2242_v7  ;;  %s2118_s7 = scalar_lea.vmem %s1873_s6, 32  ;;  %p2123_p3 = scmp.lt.s32.totalorder %s1873_s6, %s1873_s6 }
  0x2a   :  { %1964 = vmatprep.subr.mxu0 %v2150_v0  ;;  %1969 = vmatprep.subr.mxu1 %v2150_v0  ;;  %v48_v13 = vld [vmem:[#allocation5 + $0x50] sm:$0xff]  ;;  %v49_v14 = vld [vmem:[#allocation5 + $0x58] sm:$0xff]  ;;  %v50_v15 = vld [vmem:[#allocation5 + $0x60] sm:$0xff]  ;;  %v1245_v21 = vsel %vm54_vm1, %v1225_v17, 0.0  ;;  %v1242_v23 = vsel %vm54_vm1, %v1224_v18, 0.0  ;;  %v1248_v25 = vsel %vm54_vm1, %v1226_v22, 0.0  ;;  %v1230_v30 = vmul.f32 %v2244_v8, %v2244_v8  ;;  %p2119_p2 = scmp.ne.s32.totalorder %s1873_s6, %s2118_s7  ;;  %p2124_p4 = scmp.lt.s32.totalorder %s2118_s7, %s2118_s7 }
  0x2b   :  { %1240 = vadd.xlane.f32.xlu0 %v1239_v12  ;;  %v51_v16 = vld [vmem:[#allocation5 + $0x68] sm:$0xff]  ;;  %v52_v19 = vld [vmem:[#allocation5 + $0x70] sm:$0xff]  ;;  %v53_v20 = vld [vmem:[#allocation5 + $0x78] sm:$0xff]  ;;  %1246 = vadd.xlane.f32.xlu1 %v1245_v21  ;;  %v1251_v27 = vsel %vm54_vm1, %v1227_v24, 0.0  ;;  %v1254_v29 = vsel %vm54_vm1, %v1228_v26, 0.0  ;;  %v1257_v31 = vsel %vm54_vm1, %v1229_v28, 0.0  ;;  %v1231_v32 = vmul.f32 %v46_v10, %v46_v10 }
  0x2c   :  { %1957 = vmatmul.mubr.msk.f32.vlgmr.msra.gmra.mrb[0].mxu0 %vm54_vm1, %v38_v1  ;;  %1962 = vmatmul.mubr.msk.f32.vlgmr.msra.gmra.mrb[0].mxu1 %vm54_vm1, %v2206_v2  ;;  %v1260_v33 = vsel %vm54_vm1, %v1230_v30, 0.0  ;;  %v1232_v34 = vmul.f32 %v47_v11, %v47_v11  ;;  %v1233_v36 = vmul.f32 %v48_v13, %v48_v13  ;;  %v1234_v38 = vmul.f32 %v49_v14, %v49_v14  ;;  %p2125_p5 = por %p2124_p4, %p2123_p3 }
  0x2d   :  { %1965 = vmatpush3.xpose.msk.msra.mxu0 %vm54_vm1, %v40_v3  ;;  %1970 = vmatpush3.xpose.msk.msra.mxu1 %vm54_vm1, %v2213_v4  ;;  %v1263_v35 = vsel %vm54_vm1, %v1231_v32, 0.0  ;;  %v1235_v40 = vmul.f32 %v50_v15, %v50_v15  ;;  %v1236_v42 = vmul.f32 %v51_v16, %v51_v16  ;;  %v1237_v44 = vmul.f32 %v52_v19, %v52_v19 }
  0x2e   :  { %1966 = vmatprep.mubr.msk.f32.mxu0 %vm2151_vm0, %v2150_v0  ;;  %1971 = vmatprep.mubr.msk.f32.mxu1 %vm2151_vm0, %v2150_v0  ;;  %v1266_v37 = vsel %vm54_vm1, %v1232_v34, 0.0  ;;  %v1269_v39 = vsel %vm54_vm1, %v1233_v36, 0.0  ;;  %v1272_v41 = vsel %vm54_vm1, %v1234_v38, 0.0  ;;  %v1238_v46 = vmul.f32 %v53_v20, %v53_v20  ;;  %p2126_p6 = pnand %p2125_p5, %p2119_p2 }
  0x2f   :  { %1974 = vmatprep.subr.mxu0 %v2150_v0  ;;  %1979 = vmatprep.subr.mxu1 %v2150_v0  ;;  %v1275_v43 = vsel %vm54_vm1, %v1235_v40, 0.0  ;;  %v1278_v45 = vsel %vm54_vm1, %v1236_v42, 0.0  ;;  %v1281_v47 = vsel %vm54_vm1, %v1237_v44, 0.0  ;;  %v2332_v53 = vshrl.u32 %v1303_v49, 7 }
  0x30   :  { %1967 = vmatmul.mubr.msk.f32.vlgmr.msra.gmra.mrb[2].mxu0 %vm54_vm1, %v40_v3  ;;  %1972 = vmatmul.mubr.msk.f32.vlgmr.msra.gmra.mrb[2].mxu1 %vm54_vm1, %v2213_v4  ;;  %v1284_v48 = vsel %vm54_vm1, %v1238_v46, 0.0 }
  0x31   :  { %1975 = vmatpush3.xpose.msk.msra.mxu0 %vm54_vm1, %v2225_v5  ;;  %1980 = vmatpush3.xpose.msk.msra.mxu1 %vm54_vm1, %v2227_v6  ;;  %v2335_v55 = vsub.s32 %v1304_v52, %v2332_v53 }
  0x32   :  { %1976 = vmatprep.mubr.msk.f32.mxu0 %vm2151_vm0, %v2150_v0  ;;  %1981 = vmatprep.mubr.msk.f32.mxu1 %vm2151_vm0, %v2150_v0 }
  0x33   :  { %1984 = vmatprep.subr.mxu0 %v2150_v0  ;;  %1989 = vmatprep.subr.mxu1 %v2150_v0 }
  0x34   :  { %1977 = vmatmul.mubr.msk.f32.vlgmr.msra.gmra.mrb[4].mxu0 %vm54_vm1, %v2225_v5  ;;  %1982 = vmatmul.mubr.msk.f32.vlgmr.msra.gmra.mrb[4].mxu1 %vm54_vm1, %v2227_v6 }
  0x35   :  { %1985 = vmatpush3.xpose.msk.msra.mxu0 %vm54_vm1, %v2242_v7  ;;  %1990 = vmatpush3.xpose.msk.msra.mxu1 %vm54_vm1, %v2244_v8 }
  0x36   :  { %1986 = vmatprep.mubr.msk.f32.mxu0 %vm2151_vm0, %v2150_v0  ;;  %1991 = vmatprep.mubr.msk.f32.mxu1 %vm2151_vm0, %v2150_v0 }
  0x37   :  { %1994 = vmatprep.subr.mxu0 %v2150_v0  ;;  %1999 = vmatprep.subr.mxu1 %v2150_v0 }
  0x38   :  { %1987 = vmatmul.mubr.msk.f32.vlgmr.msra.gmra.mrb[6].mxu0 %vm54_vm1, %v2242_v7  ;;  %1992 = vmatmul.mubr.msk.f32.vlgmr.msra.gmra.mrb[6].mxu1 %vm54_vm1, %v2244_v8 }
  0x39   :  { %1995 = vmatpush3.xpose.msk.msra.mxu0 %vm54_vm1, %v46_v10  ;;  %1996 = vmatprep.mubr.msk.f32.mxu0 %vm2151_vm0, %v2150_v0 }
  0x3a   :  { %2000 = vmatpush3.xpose.msk.msra.mxu1 %vm54_vm1, %v47_v11  ;;  %2001 = vmatprep.mubr.msk.f32.mxu1 %vm2151_vm0, %v2150_v0 }
  0x3b   :  { %2004 = vmatprep.subr.mxu0 %v2150_v0  ;;  %2009 = vmatprep.subr.mxu1 %v2150_v0 }
  0x3c   :  { %1997 = vmatmul.mubr.msk.f32.vlgmr.msra.gmra.mrb[8].mxu0 %vm54_vm1, %v46_v10  ;;  %1243 = vadd.xlane.f32.xlu0 %v1242_v23 }
  0x3d   :  { %2002 = vmatmul.mubr.msk.f32.vlgmr.msra.gmra.mrb[8].mxu1 %vm54_vm1, %v47_v11  ;;  %2005 = vmatpush3.xpose.msk.msra.mxu0 %vm54_vm1, %v48_v13 }
  0x3e   :  { %2006 = vmatprep.mubr.msk.f32.mxu0 %vm2151_vm0, %v2150_v0  ;;  %2010 = vmatpush3.xpose.msk.msra.mxu1 %vm54_vm1, %v49_v14 }
  0x3f   :  { %2011 = vmatprep.mubr.msk.f32.mxu1 %vm2151_vm0, %v2150_v0  ;;  %2014 = vmatprep.subr.mxu0 %v2150_v0 }
  0x40   :  { %2007 = vmatmul.mubr.msk.f32.vlgmr.msra.gmra.mrb[10].mxu0 %vm54_vm1, %v48_v13  ;;  %2019 = vmatprep.subr.mxu1 %v2150_v0 }
  0x41   :  { %2012 = vmatmul.mubr.msk.f32.vlgmr.msra.gmra.mrb[10].mxu1 %vm54_vm1, %v49_v14  ;;  %2015 = vmatpush3.xpose.msk.msra.mxu0 %vm54_vm1, %v50_v15 }
  0x42   :  { %2016 = vmatprep.mubr.msk.f32.mxu0 %vm2151_vm0, %v2150_v0  ;;  %2020 = vmatpush3.xpose.msk.msra.mxu1 %vm54_vm1, %v51_v16 }
  0x43   :  { %2021 = vmatprep.mubr.msk.f32.mxu1 %vm2151_vm0, %v2150_v0  ;;  %2024 = vmatprep.subr.mxu0 %v2150_v0 }
  0x44   :  { %2017 = vmatmul.mubr.msk.f32.vlgmr.msra.gmra.mrb[12].mxu0 %vm54_vm1, %v50_v15  ;;  %2029 = vmatprep.subr.mxu1 %v2150_v0 }
  0x45   :  { %2022 = vmatmul.mubr.msk.f32.vlgmr.msra.gmra.mrb[12].mxu1 %vm54_vm1, %v51_v16  ;;  %2025 = vmatpush3.xpose.msk.msra.mxu0 %vm54_vm1, %v52_v19 }
  0x46   :  { %2026 = vmatprep.mubr.msk.f32.mxu0 %vm2151_vm0, %v2150_v0  ;;  %2030 = vmatpush3.xpose.msk.msra.mxu1 %vm54_vm1, %v53_v20 }
  0x47   :  { %2031 = vmatprep.mubr.msk.f32.mxu1 %vm2151_vm0, %v2150_v0  ;;  %1249 = vadd.xlane.f32.xlu1 %v1248_v25 }
  0x48   :  { %2027 = vmatmul.mubr.msk.f32.vlgmr.msra.gmra.mrb[14].mxu0 %vm54_vm1, %v52_v19  ;;  %1252 = vadd.xlane.f32.xlu0 %v1251_v27 }
  0x49   :  { %2032 = vmatmul.mubr.msk.f32.vlgmr.msra.gmra.mrb[14].mxu1 %vm54_vm1, %v53_v20 }
  0x4b   :  { %1255 = vadd.xlane.f32.xlu1 %v1254_v29 }
  0x4c   :  { %1258 = vadd.xlane.f32.xlu0 %v1257_v31 }
  0x4f   :  { %1261 = vadd.xlane.f32.xlu1 %v1260_v33 }
  0x50   :  { %1264 = vadd.xlane.f32.xlu0 %v1263_v35 }
  0x53   :  { %1267 = vadd.xlane.f32.xlu1 %v1266_v37 }
  0x54   :  { %1270 = vadd.xlane.f32.xlu0 %v1269_v39 }
  0x57   :  { %1273 = vadd.xlane.f32.xlu1 %v1272_v41 }
  0x58   :  { %1276 = vadd.xlane.f32.xlu0 %v1275_v43 }
  0x5b   :  { %1279 = vadd.xlane.f32.xlu1 %v1278_v45 }
  0x5c   :  { %1282 = vadd.xlane.f32.xlu0 %v1281_v47 }
  0x5f   :  { %1285 = vadd.xlane.f32.xlu1 %v1284_v48 }
  0xb8   :  { %v1241_v50 = vpop.xlane.xlu0 %1240  ;;  %v1247_v51 = vpop.xlane.xlu1 %1246 }
  0xb9   :  { %v1308_v58 = vrot.slane %v1241_v50, %v2335_v55  ;;  %v1316_v60 = vrot.slane %v1247_v51, %v2335_v55 }
  0xbb   :  { %v1487_v3 = vadd.f32 %v1308_v58, %v1241_v50  ;;  %v1489_v8 = vadd.f32 %v1316_v60, %v1247_v51 }
  0xc9   :  { %v1244_v54 = vpop.xlane.xlu0 %1243 }
  0xca   :  { %v1312_v57 = vrot.slane %v1244_v54, %v2335_v55 }
  0xcc   :  { %v1488_v61 = vadd.f32 %v1312_v57, %v1244_v54 }
  0xd4   :  { %v1250_v56 = vpop.xlane.xlu1 %1249 }
  0xd5   :  { %v1253_v59 = vpop.xlane.xlu0 %1252  ;;  %v1320_v62 = vrot.slane %v1250_v56, %v2335_v55 }
  0xd6   :  { %v1324_v12 = vrot.slane %v1253_v59, %v2335_v55 }
  0xd7   :  { %v1490_v11 = vadd.f32 %v1320_v62, %v1250_v56 }
  0xd8   :  { %v1256_v63 = vpop.xlane.xlu1 %1255  ;;  %v1491_v25 = vadd.f32 %v1324_v12, %v1253_v59 }
  0xd9   :  { %v1259_v13 = vpop.xlane.xlu0 %1258  ;;  %v1328_v16 = vrot.slane %v1256_v63, %v2335_v55 }
  0xda   :  { %v1332_v30 = vrot.slane %v1259_v13, %v2335_v55 }
  0xdb   :  { %v1492_v27 = vadd.f32 %v1328_v16, %v1256_v63 }
  0xdc   :  { %v1262_v26 = vpop.xlane.xlu1 %1261  ;;  %v1493_v39 = vadd.f32 %v1332_v30, %v1259_v13 }
  0xdd   :  { %v1265_v38 = vpop.xlane.xlu0 %1264  ;;  %v1336_v40 = vrot.slane %v1262_v26, %v2335_v55 }
  0xde   :  { %v1340_v48 = vrot.slane %v1265_v38, %v2335_v55 }
  0xdf   :  { %v1494_v49 = vadd.f32 %v1336_v40, %v1262_v26 }
  0xe0   :  { %v1268_v52 = vpop.xlane.xlu1 %1267 }
  0xff   :  { %v124_v1 = vpop.f32.mrb[0].mxu0  ;;  %v197_v2 = vpop.f32.mrb[0].mxu1 }
 0x100   :  { %v1503_v4 = vmul.f32 2.0, %v124_v1  ;;  %v1504_v5 = vmul.f32 2.0, %v197_v2  ;;  %v1958_v6 = vpop.f32.mrb[1].mxu0  ;;  %v1963_v7 = vpop.f32.mrb[1].mxu1  ;;  %v1344_v1 = vrot.slane %v1268_v52, %v2335_v55 }
 0x101   :  { %v1271_v6 = vpop.xlane.xlu0 %1270 }
 0x102   :  { %v1519_v9 = vsub.f32 %v1487_v3, %v1503_v4  ;;  %v1520_v10 = vsub.f32 %v1488_v61, %v1504_v5  ;;  %v1495_v61 = vadd.f32 %v1340_v48, %v1265_v38 }
 0x103   :  { %v270_v14 = vpop.f32.mrb[2].mxu0  ;;  %v343_v15 = vpop.f32.mrb[2].mxu1 }
 0x104   :  { %v2343_v17 = vmax.f32 %v1519_v9, 0.0  ;;  %v2345_v18 = vmax.f32 %v1520_v10, 0.0  ;;  %v1505_v19 = vmul.f32 2.0, %v270_v14  ;;  %v1506_v20 = vmul.f32 2.0, %v343_v15  ;;  %v1968_v21 = vpop.f32.mrb[3].mxu0  ;;  %v1973_v22 = vpop.f32.mrb[3].mxu1 }
 0x105   :  { %v1496_v21 = vadd.f32 %v1344_v1, %v1268_v52 }
 0x106   :  { %v1521_v23 = vsub.f32 %v1489_v8, %v1505_v19  ;;  %v1522_v24 = vsub.f32 %v1490_v11, %v1506_v20  ;;  %2042 = vrsqrt.f32 %v2343_v17  ;;  %vm1553_vm2 = vcmp.eq.f32.partialorder %v2343_v17, inf }
 0x107   :  { %v416_v28 = vpop.f32.mrb[4].mxu0  ;;  %v489_v29 = vpop.f32.mrb[4].mxu1  ;;  %2044 = vrsqrt.f32 %v2345_v18  ;;  %v1556_v2 = vand.u32 2147483648, %v2343_v17  ;;  %vm1555_vm3 = vcmp.eq.f32.partialorder %v2343_v17, 0.0  ;;  %vm1560_vm4 = vcmp.eq.f32.partialorder %v2345_v18, inf }
 0x108   :  { %v2350_v31 = vmax.f32 %v1521_v23, 0.0  ;;  %v2352_v32 = vmax.f32 %v1522_v24, 0.0  ;;  %v1507_v33 = vmul.f32 2.0, %v416_v28  ;;  %v1508_v34 = vmul.f32 2.0, %v489_v29  ;;  %v1978_v35 = vpop.f32.mrb[5].mxu0  ;;  %v1983_v36 = vpop.f32.mrb[5].mxu1 }
 0x109   :  { %v1348_v19 = vrot.slane %v1271_v6, %v2335_v55  ;;  %v1563_v20 = vand.u32 2147483648, %v2345_v18  ;;  %vm1562_vm5 = vcmp.eq.f32.partialorder %v2345_v18, 0.0  ;;  %v1274_v23 = vpop.xlane.xlu1 %1273 }
 0x10a   :  { %v1523_v37 = vsub.f32 %v1491_v25, %v1507_v33  ;;  %2046 = vrsqrt.f32 %v2350_v31  ;;  %v1524_v44 = vsub.f32 %v1492_v27, %v1508_v34  ;;  %vm1567_vm6 = vcmp.eq.f32.partialorder %v2350_v31, inf }
 0x10b   :  { %v562_v41 = vpop.f32.mrb[6].mxu0  ;;  %v635_v42 = vpop.f32.mrb[6].mxu1  ;;  %2048 = vrsqrt.f32 %v2352_v32  ;;  %v1570_v36 = vand.u32 2147483648, %v2350_v31  ;;  %v1352_v38 = vrot.slane %v1274_v23, %v2335_v55  ;;  %vm1569_vm7 = vcmp.eq.f32.partialorder %v2350_v31, 0.0 }
 0x10c   :  { %v2356_v43 = vmax.f32 %v1523_v37, 0.0  ;;  %v1509_v45 = vmul.f32 2.0, %v562_v41  ;;  %v1988_v46 = vpop.f32.mrb[7].mxu0  ;;  %v1993_v47 = vpop.f32.mrb[7].mxu1  ;;  %v1510_v50 = vmul.f32 2.0, %v635_v42  ;;  %v2360_v56 = vmax.f32 %v1524_v44, 0.0 }
 0x10d   :  { %vm1574_vm8 = vcmp.eq.f32.partialorder %v2352_v32, inf  ;;  %v1498_v52 = vadd.f32 %v1352_v38, %v1274_v23  ;;  %vm1576_vm9 = vcmp.eq.f32.partialorder %v2352_v32, 0.0 }
 0x10e   :  { %v1525_v57 = vsub.f32 %v1493_v39, %v1509_v45  ;;  %2050 = vrsqrt.f32 %v2356_v43  ;;  %v1526_v4 = vsub.f32 %v1494_v49, %v1510_v50  ;;  %v1277_v39 = vpop.xlane.xlu0 %1276  ;;  %vm1581_vm10 = vcmp.eq.f32.partialorder %v2356_v43, inf }
 0x10f   :  { %v708_v51 = vpop.f32.mrb[8].mxu0  ;;  %2052 = vrsqrt.f32 %v2360_v56  ;;  %v1356_v50 = vrot.slane %v1277_v39, %v2335_v55  ;;  %vm1583_vm11 = vcmp.eq.f32.partialorder %v2356_v43, 0.0  ;;  %vm1588_vm12 = vcmp.eq.f32.partialorder %v2360_v56, inf }
 0x110   :  { %v2043_v54 = vpop.eup %2042  ;;  %v781_v58 = vpop.f32.mrb[8].mxu1  ;;  %v2371_v9 = vmax.f32 %v1525_v57, 0.0  ;;  %v1511_v10 = vmul.f32 2.0, %v708_v51  ;;  %v2380_v25 = vmax.f32 %v1526_v4, 0.0  ;;  %v1577_v51 = vand.u32 2147483648, %v2352_v32 }
 0x111   :  { %v1998_v59 = vpop.f32.mrb[9].mxu0  ;;  %v2045_v60 = vpop.eup %2044  ;;  %v1552_v62 = vmul.f32 %v2043_v54, %v2343_v17  ;;  %v1512_v22 = vmul.f32 2.0, %v781_v58  ;;  %v1499_v1 = vadd.f32 %v1356_v50, %v1277_v39  ;;  %vm1590_vm13 = vcmp.eq.f32.partialorder %v2360_v56, 0.0 }
 0x112   :  { %v2003_v63 = vpop.f32.mrb[9].mxu1  ;;  %v1559_v3 = vmul.f32 %v2045_v60, %v2345_v18  ;;  %v1527_v26 = vsub.f32 %v1495_v61, %v1511_v10  ;;  %2054 = vrsqrt.f32 %v2371_v9  ;;  %v1280_v60 = vpop.xlane.xlu1 %1279  ;;  %vm1595_vm14 = vcmp.eq.f32.partialorder %v2371_v9, inf }
 0x113   :  { %v1554_v5 = vsel %vm1553_vm2, %v2343_v17, %v1552_v62  ;;  %v854_v7 = vpop.f32.mrb[10].mxu0  ;;  %v1528_v37 = vsub.f32 %v1496_v21, %v1512_v22  ;;  %2056 = vrsqrt.f32 %v2380_v25  ;;  %v1283_v4 = vpop.xlane.xlu0 %1282  ;;  %vm1602_vm15 = vcmp.eq.f32.partialorder %v2380_v25, inf }
 0x114   :  { %v2047_v8 = vpop.eup %2046  ;;  %v1557_v11 = vsel %vm1555_vm3, %v1556_v2, %v1554_v5  ;;  %v927_v12 = vpop.f32.mrb[10].mxu1  ;;  %v1561_v14 = vsel %vm1560_vm4, %v2345_v18, %v1559_v3  ;;  %v1497_v18 = vadd.f32 %v1348_v19, %v1271_v6  ;;  %v2391_v41 = vmax.f32 %v1527_v26, 0.0 }
 0x115   :  { %v2008_v13 = vpop.f32.mrb[11].mxu0  ;;  %1663 = vxpose.xlu0.b32.start [1/16] (narrow) %v1557_v11, 8  ;;  %v1566_v15 = vmul.f32 %v2047_v8, %v2350_v31  ;;  %v2013_v16 = vpop.f32.mrb[11].mxu1  ;;  %v1564_v27 = vsel %vm1562_vm5, %v1563_v20, %v1561_v14  ;;  %v1513_v42 = vmul.f32 2.0, %v854_v7  ;;  %v1514_v54 = vmul.f32 2.0, %v927_v12 }
 0x116   :  { %v2049_v17 = vpop.eup %2048  ;;  %v2402_v57 = vmax.f32 %v1528_v37, 0.0  ;;  %2058 = vrsqrt.f32 %v2391_v41  ;;  %v1584_v2 = vand.u32 2147483648, %v2356_v43  ;;  %v1364_v12 = vrot.slane %v1283_v4, %v2335_v55  ;;  %v1286_v19 = vpop.xlane.xlu1 %1285 }
 0x117   :  { %v1000_v24 = vpop.f32.mrb[12].mxu0  ;;  %v1568_v30 = vsel %vm1567_vm6, %v2350_v31, %v1566_v15  ;;  %v1573_v33 = vmul.f32 %v2049_v17, %v2352_v32  ;;  %v1529_v58 = vsub.f32 %v1497_v18, %v1513_v42  ;;  %v1530_v3 = vsub.f32 %v1498_v52, %v1514_v54 }
 0x118   :  { %v1073_v28 = vpop.f32.mrb[12].mxu1  ;;  %v2018_v29 = vpop.f32.mrb[13].mxu0  ;;  %v1571_v44 = vsel %vm1569_vm7, %v1570_v36, %v1568_v30  ;;  %v1515_v6 = vmul.f32 2.0, %v1000_v24  ;;  %2060 = vrsqrt.f32 %v2402_v57  ;;  %v1591_v13 = vand.u32 2147483648, %v2360_v56 }
 0x119   :  { %1664 = vxpose.xlu0.b32.cont [2/16] (narrow) %v1564_v27, 8  ;;  %v2023_v34 = vpop.f32.mrb[13].mxu1  ;;  %v2051_v35 = vpop.eup %2050  ;;  %v1575_v47 = vsel %vm1574_vm8, %v2352_v32, %v1573_v33  ;;  %v1360_v32 = vrot.slane %v1280_v60, %v2335_v55  ;;  %v2411_v5 = vmax.f32 %v1529_v58, 0.0  ;;  %v1516_v14 = vmul.f32 2.0, %v1073_v28 }
 0x11a   :  { %v1580_v48 = vmul.f32 %v2051_v35, %v2356_v43  ;;  %v2053_v49 = vpop.eup %2052  ;;  %v1578_v59 = vsel %vm1576_vm9, %v1577_v51, %v1575_v47  ;;  %v2420_v15 = vmax.f32 %v1530_v3, 0.0  ;;  %v1531_v16 = vsub.f32 %v1499_v1, %v1515_v6 }
 0x11b   :  { %v2389_v40 = vpop.f32.mrb[14].mxu0  ;;  %v1587_v62 = vmul.f32 %v2053_v49, %v2360_v56  ;;  %2062 = vrsqrt.f32 %v2411_v5  ;;  %v1501_v23 = vadd.f32 %v1364_v12, %v1283_v4  ;;  %v1598_v24 = vand.u32 2147483648, %v2371_v9 }
 0x11c   :  { %v2393_v45 = vpop.f32.mrb[14].mxu1  ;;  %v2028_v46 = vpop.f32.mrb[15].mxu0  ;;  %v1582_v61 = vsel %vm1581_vm10, %v2356_v43, %v1580_v48  ;;  %v1500_v43 = vadd.f32 %v1360_v32, %v1280_v60  ;;  %v1368_v26 = vrot.slane %v1286_v19, %v2335_v55  ;;  %vm1597_vm0 = vcmp.eq.f32.partialorder %v2371_v9, 0.0 }
 0x11d   :  { %1665 = vxpose.xlu0.b32.cont [3/16] (narrow) %v1571_v44, 8  ;;  %v2033_v31 = vpop.f32.mrb[15].mxu1  ;;  %v2055_v63 = vpop.eup %2054  ;;  %v1585_v7 = vsel %vm1583_vm11, %v1584_v2, %v1582_v61  ;;  %v1589_v8 = vsel %vm1588_vm12, %v2360_v56, %v1587_v62  ;;  %v1605_v27 = vand.u32 2147483648, %v2380_v25  ;;  %v2430_v28 = vmax.f32 %v1531_v16, 0.0 }
 0x11e   :  { %v1594_v10 = vmul.f32 %v2055_v63, %v2371_v9  ;;  %v2057_v11 = vpop.eup %2056  ;;  %v1592_v17 = vsel %vm1590_vm13, %v1591_v13, %v1589_v8  ;;  %v1532_v56 = vsub.f32 %v1500_v43, %v1516_v14  ;;  %v1517_v29 = vmul.f32 2.0, %v2389_v40 }
 0x11f   :  { %v1601_v21 = vmul.f32 %v2057_v11, %v2380_v25  ;;  %2064 = vrsqrt.f32 %v2420_v15  ;;  %vm1604_vm1 = vcmp.eq.f32.partialorder %v2380_v25, 0.0  ;;  %vm1609_vm2 = vcmp.eq.f32.partialorder %v2391_v41, inf }
 0x120   :  { %v1596_v20 = vsel %vm1595_vm14, %v2371_v9, %v1594_v10  ;;  %v2059_v22 = vpop.eup %2058  ;;  %v1502_v55 = vadd.f32 %v1368_v26, %v1286_v19  ;;  %v1518_v9 = vmul.f32 2.0, %v2393_v45  ;;  %v1612_v18 = vand.u32 2147483648, %v2391_v41 }
 0x121   :  { %1666 = vxpose.xlu0.b32.cont [4/16] (narrow) %v1578_v59, 8  ;;  %v1599_v30 = vsel %vm1597_vm0, %v1598_v24, %v1596_v20  ;;  %v1603_v33 = vsel %vm1602_vm15, %v2380_v25, %v1601_v21  ;;  %v1608_v34 = vmul.f32 %v2059_v22, %v2391_v41  ;;  %v1548_v36 = vmax.f32 %v1532_v56, 0.0  ;;  %v1695_v20 = vld [vmem:[#allocation2] sm:$0xff] }
 0x122   :  { %v2061_v35 = vpop.eup %2060  ;;  %v1533_v37 = vsub.f32 %v1501_v23, %v1517_v29  ;;  %v1606_v38 = vsel %vm1604_vm1, %v1605_v27, %v1603_v33  ;;  %2066 = vrsqrt.f32 %v2430_v28  ;;  %vm1611_vm3 = vcmp.eq.f32.partialorder %v2391_v41, 0.0 }
 0x123   :  { %v1610_v39 = vsel %vm1609_vm2, %v2391_v41, %v1608_v34  ;;  %v1615_v25 = vmul.f32 %v2061_v35, %v2402_v57  ;;  %vm1616_vm4 = vcmp.eq.f32.partialorder %v2402_v57, inf  ;;  %v1534_v42 = vsub.f32 %v1502_v55, %v1518_v9 }
 0x124   :  { %v1549_v44 = vmax.f32 %v1533_v37, 0.0  ;;  %v1613_v45 = vsel %vm1611_vm3, %v1612_v18, %v1610_v39  ;;  %v1619_v46 = vand.u32 2147483648, %v2402_v57  ;;  %2068 = vrsqrt.f32 %v1548_v36 }
 0x125   :  { %1667 = vxpose.xlu0.b32.cont [5/16] (narrow) %v1585_v7, 8  ;;  %v2063_v40 = vpop.eup %2062  ;;  %v1617_v47 = vsel %vm1616_vm4, %v2402_v57, %v1615_v25  ;;  %vm1618_vm5 = vcmp.eq.f32.partialorder %v2402_v57, 0.0  ;;  %vm1623_vm6 = vcmp.eq.f32.partialorder %v2411_v5, inf  ;;  %v1550_v41 = vmax.f32 %v1534_v42, 0.0 }
 0x126   :  { %v1622_v48 = vmul.f32 %v2063_v40, %v2411_v5  ;;  %v1620_v49 = vsel %vm1618_vm5, %v1619_v46, %v1617_v47  ;;  %v1626_v50 = vand.u32 2147483648, %v2411_v5  ;;  %2070 = vrsqrt.f32 %v1549_v44 }
 0x127   :  { %vm1625_vm7 = vcmp.eq.f32.partialorder %v2411_v5, 0.0  ;;  %vm1630_vm8 = vcmp.eq.f32.partialorder %v2420_v15, inf  ;;  %v1633_v58 = vand.u32 2147483648, %v2420_v15  ;;  %2072 = vrsqrt.f32 %v1550_v41 }
 0x128   :  { %v1624_v51 = vsel %vm1623_vm6, %v2411_v5, %v1622_v48  ;;  %vm1632_vm9 = vcmp.eq.f32.partialorder %v2420_v15, 0.0  ;;  %vm1637_vm10 = vcmp.eq.f32.partialorder %v2430_v28, inf  ;;  %v1640_v63 = vand.u32 2147483648, %v2430_v28 }
 0x129   :  { %1668 = vxpose.xlu0.b32.cont [6/16] (narrow) %v1592_v17, 8  ;;  %v2065_v31 = vpop.eup %2064  ;;  %v1627_v57 = vsel %vm1625_vm7, %v1626_v50, %v1624_v51  ;;  %vm1639_vm11 = vcmp.eq.f32.partialorder %v2430_v28, 0.0  ;;  %vm1644_vm12 = vcmp.eq.f32.partialorder %v1548_v36, inf  ;;  %v1647_v4 = vand.u32 2147483648, %v1548_v36 }
 0x12a   :  { %v1629_v52 = vmul.f32 %v2065_v31, %v2420_v15  ;;  %vm1646_vm13 = vcmp.eq.f32.partialorder %v1548_v36, 0.0  ;;  %vm1651_vm14 = vcmp.eq.f32.partialorder %v1549_v44, inf  ;;  %v1654_v10 = vand.u32 2147483648, %v1549_v44 }
 0x12b   :  { %vm1653_vm15 = vcmp.eq.f32.partialorder %v1549_v44, 0.0  ;;  %vm1658_vm0 = vcmp.eq.f32.partialorder %v1550_v41, inf  ;;  %v1661_v43 = vand.u32 2147483648, %v1550_v41  ;;  %vm1660_vm1 = vcmp.eq.f32.partialorder %v1550_v41, 0.0 }
 0x12c   :  { %v2067_v54 = vpop.eup %2066  ;;  %v1631_v59 = vsel %vm1630_vm8, %v2420_v15, %v1629_v52  ;;  %v2152_v16 = vmov 1966171168   ;;  %vm1696_vm2 = vcmp.gt.f32.partialorder %v1695_v20, 0.5  ;;  %v1751_v26 = vsub.s32 0, %v2332_v53 }
 0x12d   :  { %1669 = vxpose.xlu0.b32.cont [7/16] (narrow) %v1599_v30, 8  ;;  %v1636_v60 = vmul.f32 %v2067_v54, %v2430_v28  ;;  %v1634_v62 = vsel %vm1632_vm9, %v1633_v58, %v1631_v59  ;;  %v1702_v17 = vunpack.c.l.s4 %v2152_v16 }
 0x12e   :  { %v2069_v61 = vpop.eup %2068 }
 0x12f   :  { %v1638_v1 = vsel %vm1637_vm10, %v2430_v28, %v1636_v60  ;;  %v1643_v2 = vmul.f32 %v2069_v61, %v1548_v36  ;;  %v1703_v19 = vunpack.c.0.s8 %v1702_v17 }
 0x130   :  { %v2071_v3 = vpop.eup %2070  ;;  %v1641_v32 = vsel %vm1639_vm11, %v1640_v63, %v1638_v1  ;;  %vm1863_vm11 = vcmask 1040384  }
 0x131   :  { %1670 = vxpose.xlu0.b32.cont [8/16] (narrow) %v1606_v38, 8  ;;  %v1645_v5 = vsel %vm1644_vm12, %v1548_v36, %v1643_v2  ;;  %v1650_v6 = vmul.f32 %v2071_v3, %v1549_v44  ;;  %v2073_v7 = vpop.eup %2072  ;;  %v1706_v21 = vsub.s32 %v1703_v19, %v2332_v53 }
 0x132   :  { %v1648_v8 = vsel %vm1646_vm13, %v1647_v4, %v1645_v5  ;;  %v1657_v12 = vmul.f32 %v2073_v7, %v1550_v41 }
 0x133   :  { %v1652_v11 = vsel %vm1651_vm14, %v1549_v44, %v1650_v6 }
 0x134   :  { %v1655_v13 = vsel %vm1653_vm15, %v1654_v10, %v1652_v11  ;;  %v1659_v14 = vsel %vm1658_vm0, %v1550_v41, %v1657_v12 }
 0x135   :  { %1671 = vxpose.xlu0.b32.cont [9/16] (narrow) %v1613_v45, 8  ;;  %v1662_v15 = vsel %vm1660_vm1, %v1661_v43, %v1659_v14 }
 0x139   :  { %1672 = vxpose.xlu0.b32.cont [10/16] (narrow) %v1620_v49, 8 }
 0x13d   :  { %1673 = vxpose.xlu0.b32.cont [11/16] (narrow) %v1627_v57, 8 }
 0x141   :  { %1674 = vxpose.xlu0.b32.cont [12/16] (narrow) %v1634_v62, 8 }
 0x145   :  { %1675 = vxpose.xlu0.b32.cont [13/16] (narrow) %v1641_v32, 8 }
 0x149   :  { %1676 = vxpose.xlu0.b32.cont [14/16] (narrow) %v1648_v8, 8 }
 0x14d   :  { %1677 = vxpose.xlu0.b32.cont [15/16] (narrow) %v1655_v13, 8 }
 0x151   :  { %1678 = vxpose.xlu0.b32.end [16/16] (narrow) %v1662_v15, 8 }
 0x195   :  { %v1679_v22 = vpop.trf.xlu0 }
 0x196   :  { %v1697_v23 = vsel %vm1696_vm2, %v1679_v22, -1e+09  ;;  %v1698_v55 = vsel %vm1696_vm2, 1e+09, %v1679_v22 }
 0x197   :  { %v1700_v24 = vcombine.high %v1697_v23, %v1697_v23  ;;  %v1707_v56 = vrot.slane %v1697_v23, %v1706_v21 }
 0x199   :  { %v1714_v27 = vrot.slane %v1700_v24, %v1706_v21  ;;  %v1715_v28 = vcombine.high %v1707_v56, %v1707_v56  ;;  %v1723_v29 = vrot.slane %v1707_v56, %v1706_v21 }
 0x19b   :  { %v1716_v30 = vcombine.high %v1714_v27, %v1714_v27  ;;  %v1730_v33 = vrot.slane %v1714_v27, %v1706_v21  ;;  %v1737_v34 = vrot.slane %v1715_v28, %v1706_v21  ;;  %v1745_v35 = vcombine.high %v1723_v29, %v1723_v29 }
 0x19c   :  { %v1752_v9 = vrot.slane %v1723_v29, %v1751_v26 }
 0x19d   :  { %v1744_v18 = vrot.slane %v1716_v30, %v1706_v21  ;;  %v1746_v36 = vcombine.high %v1730_v33, %v1730_v33  ;;  %v1747_v37 = vcombine.high %v1737_v34, %v1737_v34  ;;  %v1756_v38 = vrot.slane %v1737_v34, %v1751_v26 }
 0x19e   :  { %v1760_v39 = vrot.slane %v1745_v35, %v1751_v26  ;;  %v1768_v25 = vrot.slane %v1730_v33, %v1751_v26  ;;  %v1789_v40 = vsub.f32 %v1752_v9, %v1698_v55 }
 0x19f   :  { %v1748_v42 = vcombine.high %v1744_v18, %v1744_v18  ;;  %v1764_v44 = vrot.slane %v1747_v37, %v1751_v26  ;;  %v1772_v45 = vrot.slane %v1744_v18, %v1751_v26  ;;  %v1776_v53 = vrot.slane %v1746_v36, %v1751_v26 }
 0x1a0   :  { %v1790_v46 = vsub.f32 %v1756_v38, %v1698_v55  ;;  %v1791_v47 = vsub.f32 %v1760_v39, %v1698_v55  ;;  %v1793_v48 = vsub.f32 %v1768_v25, %v1698_v55  ;;  %v1797_v31 = vadd.f32 0.2, %v1789_v40 }
 0x1a1   :  { %v1780_v41 = vrot.slane %v1748_v42, %v1751_v26  ;;  %v1792_v49 = vsub.f32 %v1764_v44, %v1698_v55  ;;  %v1794_v50 = vsub.f32 %v1772_v45, %v1698_v55  ;;  %v1795_v54 = vsub.f32 %v1776_v53, %v1698_v55 }
 0x1a2   :  { %v1798_v51 = vadd.f32 0.2, %v1790_v46  ;;  %v1799_v52 = vadd.f32 0.2, %v1791_v47  ;;  %v1801_v58 = vadd.f32 0.2, %v1793_v48 }
 0x1a3   :  { %v1800_v57 = vadd.f32 0.2, %v1792_v49  ;;  %v1805_v59 = vmax.f32 %v1797_v31, 0.0  ;;  %v1796_v62 = vsub.f32 %v1780_v41, %v1698_v55  ;;  %v1802_v63 = vadd.f32 0.2, %v1794_v50 }
 0x1a4   :  { %v1806_v60 = vmax.f32 %v1798_v51, 0.0  ;;  %v1807_v61 = vmax.f32 %v1799_v52, 0.0  ;;  %v1803_v3 = vadd.f32 0.2, %v1795_v54  ;;  %v1809_v32 = vmax.f32 %v1801_v58, 0.0 }
 0x1a5   :  { %v1808_v1 = vmax.f32 %v1800_v57, 0.0  ;;  %vm1826_vm3 = vcmp.gt.f32.partialorder %v1805_v59, 0.0  ;;  %v1804_v6 = vadd.f32 0.2, %v1796_v62  ;;  %v1810_v8 = vmax.f32 %v1802_v63, 0.0 }
 0x1a6   :  { %v1813_v2 = vadd.f32 %v1806_v60, %v1805_v59  ;;  %vm1827_vm4 = vcmp.gt.f32.partialorder %v1806_v60, 0.0  ;;  %vm1828_vm5 = vcmp.gt.f32.partialorder %v1807_v61, 0.0  ;;  %v1914_v7 = vsel %vm1826_vm3, 1.0, %v2150_v0 }
 0x1a7   :  { %v1915_v5 = vsel %vm1827_vm4, 1.0, %v2150_v0  ;;  %vm1829_vm6 = vcmp.gt.f32.partialorder %v1808_v1, 0.0  ;;  %v1916_v12 = vsel %vm1828_vm5, 1.0, %v2150_v0  ;;  %v1811_v13 = vmax.f32 %v1803_v3, 0.0 }
 0x1a8   :  { %v1814_v4 = vadd.f32 %v1813_v2, %v1807_v61  ;;  %v1850_v11 = vadd.f32 %v1915_v5, %v1914_v7  ;;  %vm1830_vm7 = vcmp.gt.f32.partialorder %v1809_v32, 0.0  ;;  %v1917_v15 = vsel %vm1829_vm6, 1.0, %v2150_v0 }
 0x1a9   :  { %v1812_v16 = vmax.f32 %v1804_v6, 0.0  ;;  %vm1831_vm8 = vcmp.gt.f32.partialorder %v1810_v8, 0.0  ;;  %v1918_v20 = vsel %vm1830_vm7, 1.0, %v2150_v0  ;;  %vm1832_vm9 = vcmp.gt.f32.partialorder %v1811_v13, 0.0 }
 0x1aa   :  { %v1815_v10 = vadd.f32 %v1814_v4, %v1808_v1  ;;  %v1851_v14 = vadd.f32 %v1916_v12, %v1850_v11  ;;  %v1919_v23 = vsel %vm1831_vm8, 1.0, %v2150_v0  ;;  %v1920_v26 = vsel %vm1832_vm9, 1.0, %v2150_v0 }
 0x1ab   :  { %vm1833_vm10 = vcmp.gt.f32.partialorder %v1812_v16, 0.0 }
 0x1ac   :  { %v1816_v43 = vadd.f32 %v1815_v10, %v1809_v32  ;;  %v1852_v19 = vadd.f32 %v1917_v15, %v1851_v14  ;;  %v1921_v29 = vsel %vm1833_vm10, 1.0, %v2150_v0 }
 0x1ae   :  { %v1817_v17 = vadd.f32 %v1816_v43, %v1810_v8  ;;  %v1853_v22 = vadd.f32 %v1918_v20, %v1852_v19 }
 0x1b0   :  { %v1818_v21 = vadd.f32 %v1817_v17, %v1811_v13  ;;  %v1854_v24 = vadd.f32 %v1919_v23, %v1853_v22 }
 0x1b2   :  { %v1819_v56 = vadd.f32 %v1818_v21, %v1812_v16  ;;  %v1855_v28 = vadd.f32 %v1920_v26, %v1854_v24 }
 0x1b4   :  { %v1820_v27 = vrot.slane %v1819_v56, 4  ;;  %v1856_v33 = vadd.f32 %v1921_v29, %v1855_v28 }
 0x1b6   :  { %v1821_v30 = vadd.f32 %v1820_v27, %v1819_v56  ;;  %v1857_v35 = vrot.slane %v1856_v33, 4 }
 0x1b8   :  { %v1822_v34 = vrot.slane %v1821_v30, 2  ;;  %v1858_v9 = vadd.f32 %v1857_v35, %v1856_v33 }
 0x1ba   :  { %v1823_v55 = vadd.f32 %v1822_v34, %v1821_v30  ;;  %v1859_v18 = vrot.slane %v1858_v9, 2 }
 0x1bc   :  { %v1824_v36 = vrot.slane %v1823_v55, 1  ;;  %v1860_v37 = vadd.f32 %v1859_v18, %v1858_v9 }
 0x1be   :  { %v1861_v38 = vrot.slane %v1860_v37, 1  ;;  %v1825_v39 = vadd.f32 %v1824_v36, %v1823_v55 }
 0x1c0   :  { %v1862_v25 = vadd.f32 %v1861_v38, %v1860_v37 }
 0x1c2   :  { %v1864_v40 = vsel %vm1863_vm11, %v1825_v39, %v1862_v25 }
 0x1c3   :  { %1865 = vst [vmem:[#allocation7] sm:$0x3] %v1864_v40 }
 0x1c4   :  { %2129 = shalt.err (!%p2126_p6)
}
 0x1c5   :  { %s2130_s10 = scalar_lea.hbm %s2487_s2, 32 }
 0x1c6   :  { %p2131_p7 = scmp.ne.s32.totalorder %s2487_s2, %s2130_s10  ;;  %p2134_p8 = scmp.lt.u32.totalorder %s2130_s10, %s2487_s2 }
 0x1c8   :  { %p2136_p9 = pnand %p2134_p8, %p2131_p7 }
 0x1ca   :  { %2139 = shalt.err (!%p2136_p9)
}
 0x1cb   :  { %1875 = dma.vmem_to_hbm [thread:$0]  %s1873_s6, 32, %s2487_s2, [#allocation4]  }
 0x1cc   :  { %2144 = dma.done.wait [#allocation4], 32  }
 0x1cd   :  { %2145 = vsyncadd [#allocation4], 4294967264 }
 0x1ce   :  { %1879 = vsyncpa [#allocation3], 1 }
 0x1cf   :  { %1880 = vsyncpa [#allocation6], 1 }
 0x1d0   :  { %1881 = vsyncpa [#allocation4], 1 }

</bundles_post_ra>
